<compile_context>
chip_gen: v7x
topology: tpu7x:2x2x1
jax: 0.10.0
libtpu: 0.0.40
codegen_flags: <defaults>
</compile_context>

<pallas_src>
import jax
import jax.numpy as jnp
from jax.experimental import pallas as pl
from jax.experimental.pallas import tpu as pltpu

DELTA_T = 0.08
SAT_I = 7.268
NS_T = 0.572

_BASE = 1.0 - NS_T            # folded constant
_NEG_INV_SAT = -1.0 / SAT_I   # folded constant (mul instead of div)

MAX_LANES = 2048              # widest lane-dense last dim we will collapse to
FALLBACK_LANES = 512          # lane width for the (rare) pad fallback
BLOCK_BYTES = 4 * 1024 * 1024 # per-block byte budget (dtype-independent)
SMALL_BYTES = 256 * 1024      # below this, skip the kernel (pure jnp fast path)
VMEM_LIMIT_BYTES = 40 << 20   # explicit scope: safe on v5e (16 MiB default) .. v7x


def _act_kernel(x_ref, o_ref):
    # Compute in f32 regardless of input dtype (exp precision), cast on store.
    x = x_ref[...].astype(jnp.float32)
    y = x * (_BASE - DELTA_T * jnp.exp(x * _NEG_INV_SAT))
    o_ref[...] = y.astype(o_ref.dtype)


def _sublane_multiple(dtype):
    itemsize = jnp.dtype(dtype).itemsize
    if itemsize >= 4:
        return 8
    if itemsize == 2:
        return 16
    return 32


def _pick_lanes(n):
    """Largest multiple of 128 (<= MAX_LANES) that divides n, else None."""
    for lanes in range(MAX_LANES, 127, -128):
        if n % lanes == 0:
            return lanes
    return None


def _jnp_act(x):
    xf = x.astype(jnp.float32)
    y = xf * (_BASE - DELTA_T * jnp.exp(xf * _NEG_INV_SAT))
    return y.astype(x.dtype)


def our_act_func(x, *, force_pallas=False):
    """Elementwise OurActFunc activation via a Pallas TPU kernel.

    Accepts any shape / float dtype; returns same shape & dtype.
    """
    orig_shape = x.shape
    dtype = x.dtype
    n = x.size
    itemsize = jnp.dtype(dtype).itemsize

    if n == 0:
        return x

    # Small-input fast path: launch + single-step overhead dominates; let XLA fuse it.
    if (not force_pallas) and n * itemsize < SMALL_BYTES:
        return _jnp_act(x)

    sub = _sublane_multiple(dtype)

    lanes = _pick_lanes(n)
    if lanes is not None:
        # Free reshape (contiguous): one HBM read + one HBM write, no pad, no slice.
        rows = n // lanes
        slab = x.reshape(rows, lanes)
        padded = False
    else:
        # Nothing divides: pad only up to the next lane multiple (< 512 elems waste).
        # Zero padding is semantically safe because f(0) == 0 exactly.
        lanes = FALLBACK_LANES
        rows = pl.cdiv(n, lanes)
        flat = jnp.pad(jnp.ravel(x), (0, rows * lanes - n))
        slab = flat.reshape(rows, lanes)
        padded = True

    # Row tile from a fixed byte budget (dtype-aware), sublane-aligned, never larger
    # than the array's row extent.  Ragged final block handles any remainder.
    if rows < sub:
        row_tile = rows                       # block == full (tiny) row extent
    else:
        budget_rows = BLOCK_BYTES // (lanes * itemsize)
        budget_rows = max(sub, (budget_rows // sub) * sub)
        row_tile = min(budget_rows, (rows // sub) * sub)

    grid = (pl.cdiv(rows, row_tile),)

    out = pl.pallas_call(
        _act_kernel,
        out_shape=jax.ShapeDtypeStruct((rows, lanes), dtype),
        grid_spec=pltpu.PrefetchScalarGridSpec(
            num_scalar_prefetch=0,
            grid=grid,
            in_specs=[pl.BlockSpec((row_tile, lanes), lambda i: (i, 0))],
            out_specs=pl.BlockSpec((row_tile, lanes), lambda i: (i, 0)),
        ),
        compiler_params=pltpu.CompilerParams(
            dimension_semantics=("parallel",),
            vmem_limit_bytes=VMEM_LIMIT_BYTES,
        ),
    )(slab)

    if padded:
        return out.reshape(-1)[:n].reshape(orig_shape)
    return out.reshape(orig_shape)


def _reference(x):
    return x * (1.0 - DELTA_T * jnp.exp(-x / SAT_I) - NS_T)


if __name__ == "__main__":
    key = jax.random.PRNGKey(0)
    k1, k2, k3, k4 = jax.random.split(key, 4)

    # 1) Module-sized input (NCHW 2x4x16x16): exercises the small-tensor fast path.
    x_small = jax.random.normal(k1, (2, 4, 16, 16), dtype=jnp.float32)
    y_small = jax.block_until_ready(our_act_func(x_small))
    assert y_small.shape == x_small.shape and y_small.dtype == x_small.dtype
    assert jnp.allclose(y_small, _reference(x_small), atol=1e-5, rtol=1e-5)

    # 2) Same small input forced through the Pallas kernel (lane-collapsed, no pad).
    y_small_k = jax.block_until_ready(our_act_func(x_small, force_pallas=True))
    assert jnp.allclose(y_small_k, _reference(x_small), atol=1e-5, rtol=1e-5)

    # 3) Larger 128-divisible input: no-pad lane-collapsed path with a big block.
    x_big = jax.random.normal(k2, (2, 4, 128, 640), dtype=jnp.float32)
    y_big = jax.block_until_ready(our_act_func(x_big))
    assert jnp.allclose(y_big, _reference(x_big), atol=1e-5, rtol=1e-5)

    # 4) Ragged (odd) element count: padded fallback path + ragged final block.
    x_rag = jax.random.normal(k3, (257, 513), dtype=jnp.float32)
    y_rag = jax.block_until_ready(our_act_func(x_rag))
    assert jnp.allclose(y_rag, _reference(x_rag), atol=1e-5, rtol=1e-5)

    # 5) bf16 input: f32 compute inside the kernel, cast on store.
    x_bf = jax.random.normal(k4, (4, 16, 64, 128), dtype=jnp.bfloat16)
    y_bf = jax.block_until_ready(our_act_func(x_bf))
    ref_bf = _reference(x_bf.astype(jnp.float32)).astype(jnp.bfloat16)
    assert y_bf.dtype == jnp.bfloat16
    assert jnp.allclose(y_bf.astype(jnp.float32), ref_bf.astype(jnp.float32),
                        atol=2e-2, rtol=2e-2)

    print("KERNEL_OK")
</pallas_src>

<mosaic_0001>
module attributes {stable_mosaic.version = 11 : i64} {
  func.func @_act_kernel(%arg0: i32, %arg1: memref<1x2048xf32, #tpu.memory_space<vmem>>, %arg2: memref<1x2048xf32, #tpu.memory_space<vmem>>) attributes {dimension_semantics = [#tpu.dimension_semantics<parallel>], iteration_bounds = array<i64: 1>, scalar_prefetch = 0 : i64, scratch_operands = 0 : i64, tpu.core_type = #tpu.core_type<tc>, window_params = [{transform_indices = @transform_0, window_bounds = array<i64: 1, 2048>}, {transform_indices = @transform_1, window_bounds = array<i64: 1, 2048>}]} {
    %c0 = arith.constant 0 : index
    %c0_0 = arith.constant 0 : index
    %0 = vector.load %arg1[%c0, %c0_0] : memref<1x2048xf32, #tpu.memory_space<vmem>>, vector<1x2048xf32>
    %cst = arith.constant -0.13758944 : f32
    %1 = vector.broadcast %cst : f32 to vector<1x2048xf32>
    %2 = arith.mulf %0, %1 : vector<1x2048xf32>
    %3 = math.exp %2 : vector<1x2048xf32>
    %cst_1 = arith.constant 8.000000e-02 : f32
    %4 = vector.broadcast %cst_1 : f32 to vector<1x2048xf32>
    %5 = arith.mulf %4, %3 : vector<1x2048xf32>
    %cst_2 = arith.constant 4.280000e-01 : f32
    %6 = vector.broadcast %cst_2 : f32 to vector<1x2048xf32>
    %7 = arith.subf %6, %5 : vector<1x2048xf32>
    %8 = arith.mulf %0, %7 : vector<1x2048xf32>
    %c0_3 = arith.constant 0 : index
    %c0_4 = arith.constant 0 : index
    %9 = vector.load %arg2[%c0_3, %c0_4] : memref<1x2048xf32, #tpu.memory_space<vmem>>, vector<1x2048xf32>
    tpu.vector_store %arg2[%c0_3, %c0_4], %8 {strides = array<i32>} : memref<1x2048xf32, #tpu.memory_space<vmem>>, vector<1x2048xf32>,
    return
  }
  func.func @transform_0(%arg0: i32) -> (i32, i32) {
    %c0_i32 = arith.constant 0 : i32
    %c0_i32_0 = arith.constant 0 : i32
    return %arg0, %c0_i32 : i32, i32
  }
  func.func @transform_1(%arg0: i32) -> (i32, i32) {
    %c0_i32 = arith.constant 0 : i32
    %c0_i32_0 = arith.constant 0 : i32
    return %arg0, %c0_i32 : i32, i32
  }
}

</mosaic_0001>

<bundles_post_ra>
// kernel: tpu_custom_call.1
= control target key start
LH: loop header
LB: loop body
LE: loop exit
PB: predicated region body
PF: predicated region fallthrough
CT: control target
= control target key end

     0   :  { %6 = vsyncpa [#allocation3], 0  ;;  %s142_s0 = inlined_call_operand.hbm [shape: f32[1,2048], index: 0, kind: input, shape index: {}]   ;;  %s143_s1 = inlined_call_operand.hbm [shape: f32[1,2048], index: 1, kind: output, shape index: {}]  }
   0x1   :  { %7 = vsyncpa [#allocation4], 0  ;;  %s106_s6 = smov [#allocation2]   ;;  %s58_s10 = scalar_lea.hbm %s142_s0, 256 }
   0x2   :  { %s14_s7 = sshll.u32 %s106_s6, 4  ;;  %p59_p0 = scmp.ne.s32.totalorder %s142_s0, %s58_s10  ;;  %s15_s7 = int_to_ptr.vmem [resolvable:$true] %s14_s7 }
   0x3   :  { %p62_p1 = scmp.lt.u32.totalorder %s58_s10, %s142_s0 }
   0x5   :  { %p64_p2 = pnand %p62_p1, %p59_p0 }
   0x7   :  { %67 = shalt.err (!%p64_p2)
}
   0x8   :  { %s68_s15 = scalar_lea.vmem %s15_s7, 256  ;;  %p73_p4 = scmp.lt.s32.totalorder %s15_s7, %s15_s7 }
   0x9   :  { %p69_p3 = scmp.ne.s32.totalorder %s15_s7, %s68_s15  ;;  %p74_p5 = scmp.lt.s32.totalorder %s68_s15, %s68_s15 }
   0xb   :  { %p75_p6 = por %p74_p5, %p73_p4 }
   0xd   :  { %p76_p7 = pnand %p75_p6, %p69_p3 }
   0xf   :  { %79 = shalt.err (!%p76_p7)
}
  0x10   :  { %17 = dma.hbm_to_vmem [thread:$0]  %s142_s0, 256, %s15_s7, [#allocation3]  }
  0x11   :  { %102 = dma.done.wait [#allocation3], 256  }
  0x12   :  { %103 = vsyncadd [#allocation3], 4294967040  ;;  %v21_v0 = vld [vmem:[#allocation2] sm:$0xff]  ;;  %v22_v1 = vld [vmem:[#allocation2 + $0x8] sm:$0xff]  ;;  %s107_s18 = smov [#allocation5]  }
  0x13   :  { %v23_v2 = vmul.f32 -0.13758944, %v21_v0  ;;  %v24_v3 = vmul.f32 -0.13758944, %v22_v1  ;;  %s43_s19 = sshll.u32 %s107_s18, 4  ;;  %s44_s19 = int_to_ptr.vmem [resolvable:$true] %s43_s19 }
  0x14   :  { %s80_s0 = scalar_lea.vmem %s44_s19, 256  ;;  %p85_p9 = scmp.lt.s32.totalorder %s44_s19, %s44_s19 }
  0x15   :  { %v25_v4 = vmul.f32 1.442695, %v23_v2  ;;  %v27_v5 = vmul.f32 1.442695, %v24_v3  ;;  %p81_p8 = scmp.ne.s32.totalorder %s44_s19, %s80_s0  ;;  %p86_p10 = scmp.lt.s32.totalorder %s80_s0, %s80_s0 }
  0x17   :  { %54 = vpow2.f32 %v25_v4  ;;  %p87_p11 = por %p86_p10, %p85_p9 }
  0x18   :  { %56 = vpow2.f32 %v27_v5 }
  0x19   :  { %p88_p12 = pnand %p87_p11, %p81_p8 }
  0x21   :  { %v55_v6 = vpop.eup %54 }
  0x22   :  { %v57_v7 = vpop.eup %56  ;;  %v29_v8 = vmul.f32 0.08, %v55_v6 }
  0x23   :  { %v30_v9 = vmul.f32 0.08, %v57_v7 }
  0x24   :  { %v31_v10 = vsub.f32 0.428, %v29_v8 }
  0x25   :  { %v32_v11 = vsub.f32 0.428, %v30_v9 }
  0x26   :  { %v33_v12 = vmul.f32 %v31_v10, %v21_v0 }
  0x27   :  { %v34_v13 = vmul.f32 %v32_v11, %v22_v1 }
  0x28   :  { %35 = vst [vmem:[#allocation5] sm:$0xff] %v33_v12 }
  0x29   :  { %36 = vst [vmem:[#allocation5 + $0x8] sm:$0xff] %v34_v13 }
  0x2a   :  { %91 = shalt.err (!%p88_p12)
}
  0x2b   :  { %s92_s22 = scalar_lea.hbm %s143_s1, 256 }
  0x2c   :  { %p93_p13 = scmp.ne.s32.totalorder %s143_s1, %s92_s22  ;;  %p96_p0 = scmp.lt.u32.totalorder %s92_s22, %s143_s1 }
  0x2e   :  { %p98_p1 = pnand %p96_p0, %p93_p13 }
  0x30   :  { %101 = shalt.err (!%p98_p1)
}
  0x31   :  { %46 = dma.vmem_to_hbm [thread:$0]  %s44_s19, 256, %s143_s1, [#allocation4]  }
  0x32   :  { %104 = dma.done.wait [#allocation4], 256  }
  0x33   :  { %105 = vsyncadd [#allocation4], 4294967040 }
  0x34   :  { %50 = vsyncpa [#allocation3], 1 }
  0x35   :  { %51 = vsyncpa [#allocation4], 1 }

</bundles_post_ra>
